<compile_context>
chip_gen: v7x
topology: tpu7x:2x2x1
jax: 0.10.0
libtpu: 0.0.40
codegen_flags: <defaults>
</compile_context>

<pallas_src>
import functools
import math

import jax
import jax.numpy as jnp
from jax.experimental import pallas as pl
from jax.experimental.pallas import tpu as pltpu


def _layernorm(h, gamma, beta, eps=1e-5):
    # f32 layernorm, matches torch nn.LayerNorm defaults (and the fp16-safe wrapper).
    mu = jnp.mean(h, axis=-1, keepdims=True)
    var = jnp.mean((h - mu) ** 2, axis=-1, keepdims=True)
    return (h - mu) * jax.lax.rsqrt(var + eps) * gamma + beta


def _block_kernel(n_head, hidden_chunk,
                  x_ref,
                  wqkv_ref, bqkv_ref, wout_ref, bout_ref,
                  g1_ref, b1_ref, g2_ref, b2_ref,
                  wfc_ref, bfc_ref, wproj_ref, bproj_ref,
                  o_ref,
                  k_sc, v_sc):
    L, D = x_ref.shape[1], x_ref.shape[2]
    TL = o_ref.shape[1]
    Dh = D // n_head
    H = wfc_ref.shape[1]
    t = pl.program_id(1)

    # ---- once per batch element: K, V for the full sequence into VMEM scratch ----
    @pl.when(t == 0)
    def _():
        xf = x_ref[0].astype(jnp.float32)                                # (L, D)
        h = _layernorm(xf, g1_ref[0], b1_ref[0]).astype(jnp.bfloat16)
        kv = jnp.dot(h, wqkv_ref[:, D:],
                     preferred_element_type=jnp.float32) + bqkv_ref[0, D:]
        k_sc[...] = kv[:, :D].astype(jnp.bfloat16)
        v_sc[...] = kv[:, D:].astype(jnp.bfloat16)

    # ---- per sequence tile ----
    row0 = pl.multiple_of(t * TL, TL)
    x_t = x_ref[0, pl.ds(row0, TL), :].astype(jnp.float32)               # (TL, D)

    # Q for this tile (1/sqrt(Dh) already folded into wqkv/bqkv on the host).
    h1 = _layernorm(x_t, g1_ref[0], b1_ref[0]).astype(jnp.bfloat16)
    q_t = (jnp.dot(h1, wqkv_ref[:, :D],
                   preferred_element_type=jnp.float32)
           + bqkv_ref[0, :D]).astype(jnp.bfloat16)                       # (TL, D)

    # Attention: per-head accumulation directly through the output projection.
    acc = jnp.zeros((TL, D), jnp.float32)
    for hd in range(n_head):                                             # static unroll
        c0 = hd * Dh
        qh = q_t[:, c0:c0 + Dh]                                          # (TL, Dh) bf16
        kh = k_sc[:, c0:c0 + Dh]                                         # (L,  Dh) bf16
        vh = v_sc[:, c0:c0 + Dh]                                         # (L,  Dh) bf16
        s = jnp.einsum("qd,kd->qk", qh, kh,
                       preferred_element_type=jnp.float32)               # (TL, L) f32
        s = s - jnp.max(s, axis=-1, keepdims=True)
        p = jnp.exp(s)
        p = p * pl.reciprocal(jnp.sum(p, axis=-1, keepdims=True), approx=True)
        oh = jnp.dot(p.astype(jnp.bfloat16), vh,
                     preferred_element_type=jnp.float32)                 # (TL, Dh)
        acc = acc + jnp.dot(oh.astype(jnp.bfloat16), wout_ref[c0:c0 + Dh, :],
                            preferred_element_type=jnp.float32)
    x1 = x_t + acc + bout_ref[0]                                         # (TL, D) f32

    # ---- MLP with QuickGELU, hidden dim processed in chunks ----
    h2 = _layernorm(x1, g2_ref[0], b2_ref[0]).astype(jnp.bfloat16)
    mlp = jnp.zeros((TL, D), jnp.float32)
    for c in range(H // hidden_chunk):                                   # static unroll
        off = c * hidden_chunk
        fc = jnp.dot(h2, wfc_ref[:, off:off + hidden_chunk],
                     preferred_element_type=jnp.float32) + bfc_ref[0, off:off + hidden_chunk]
        fc = fc * jax.nn.sigmoid(1.702 * fc)                             # QuickGELU (f32)
        mlp = mlp + jnp.dot(fc.astype(jnp.bfloat16),
                            wproj_ref[off:off + hidden_chunk, :],
                            preferred_element_type=jnp.float32)

    o_ref[0] = (x1 + mlp + bproj_ref[0]).astype(o_ref.dtype)


def _pick_tile(n, candidates):
    for c in candidates:
        if n % c == 0:
            return c
    return n


def residual_attention_block(x, params, n_head, *, seq_tile=None, hidden_chunk=None):
    """x: (N, L, D).  params: dict of pre-transposed f32 weights (y = x @ W + b)."""
    N, L, D = x.shape
    H = 4 * D
    TL = seq_tile if seq_tile is not None else _pick_tile(L, (256, 128, 64, 32, 16, 8))
    HC = hidden_chunk if hidden_chunk is not None else _pick_tile(H, (1024, 512, 256, 128, 64, 32))
    assert L % TL == 0 and H % HC == 0

    # Fold the 1/sqrt(Dh) attention scale into the Q columns of the QKV projection
    # and cast matmul weights to bf16 (accumulation stays f32 inside the kernel).
    scale = 1.0 / math.sqrt(D // n_head)
    w_qkv = params["w_qkv"].astype(jnp.float32)
    w_qkv = jnp.concatenate([w_qkv[:, :D] * scale, w_qkv[:, D:]], axis=1)
    b_qkv = params["b_qkv"].astype(jnp.float32)
    b_qkv = jnp.concatenate([b_qkv[:, :D] * scale, b_qkv[:, D:]], axis=1)

    weight_args = (
        w_qkv.astype(jnp.bfloat16), b_qkv,
        params["w_out"].astype(jnp.bfloat16), params["b_out"].astype(jnp.float32),
        params["ln1_g"].astype(jnp.float32), params["ln1_b"].astype(jnp.float32),
        params["ln2_g"].astype(jnp.float32), params["ln2_b"].astype(jnp.float32),
        params["w_fc"].astype(jnp.bfloat16), params["b_fc"].astype(jnp.float32),
        params["w_proj"].astype(jnp.bfloat16), params["b_proj"].astype(jnp.float32),
    )

    def full_spec(arr):
        nd = arr.ndim
        return pl.BlockSpec(arr.shape, lambda b, t, _nd=nd: (0,) * _nd)

    # x is kept resident for the whole batch element (block index constant over t),
    # so it is DMA'd once per batch; the output streams per sequence tile.
    in_specs = [pl.BlockSpec((1, L, D), lambda b, t: (b, 0, 0))]
    in_specs += [full_spec(w) for w in weight_args]
    out_spec = pl.BlockSpec((1, TL, D), lambda b, t: (b, t, 0))

    # Explicit VMEM budget: weights (assume double-buffered), resident x block,
    # output tiles, K/V scratch, plus headroom for matmul intermediates.
    weight_bytes = sum(int(w.size) * w.dtype.itemsize for w in weight_args)
    vmem_limit = min(
        2 * weight_bytes + 2 * L * D * 4 + 2 * TL * D * 4 + 2 * L * D * 2
        + 8 * TL * max(L, HC) * 4 + (16 << 20),
        100 << 20)

    kernel = functools.partial(_block_kernel, n_head, HC)

    return pl.pallas_call(
        kernel,
        out_shape=jax.ShapeDtypeStruct((N, L, D), x.dtype),
        grid_spec=pltpu.PrefetchScalarGridSpec(
            num_scalar_prefetch=0,
            grid=(N, L // TL),
            in_specs=in_specs,
            out_specs=out_spec,
            scratch_shapes=[
                pltpu.VMEM((L, D), jnp.bfloat16),   # K (full sequence, per batch)
                pltpu.VMEM((L, D), jnp.bfloat16),   # V
            ],
        ),
        compiler_params=pltpu.CompilerParams(
            dimension_semantics=("parallel", "arbitrary"),
            vmem_limit_bytes=int(vmem_limit)),
    )(x, *weight_args)


def init_params(key, d_model, n_head):
    ks = jax.random.split(key, 8)
    s = 0.02
    # torch Linear / in_proj weights are (out, in); store transposed so the
    # kernel computes y = x @ W + b directly.
    return {
        "w_qkv":  (jax.random.normal(ks[0], (d_model, 3 * d_model)) * s).astype(jnp.float32),
        "b_qkv":  (jax.random.normal(ks[1], (1, 3 * d_model)) * s).astype(jnp.float32),
        "w_out":  (jax.random.normal(ks[2], (d_model, d_model)) * s).astype(jnp.float32),
        "b_out":  (jax.random.normal(ks[3], (1, d_model)) * s).astype(jnp.float32),
        "ln1_g":  jnp.ones((1, d_model), jnp.float32),
        "ln1_b":  jnp.zeros((1, d_model), jnp.float32),
        "ln2_g":  jnp.ones((1, d_model), jnp.float32),
        "ln2_b":  jnp.zeros((1, d_model), jnp.float32),
        "w_fc":   (jax.random.normal(ks[4], (d_model, 4 * d_model)) * s).astype(jnp.float32),
        "b_fc":   (jax.random.normal(ks[5], (1, 4 * d_model)) * s).astype(jnp.float32),
        "w_proj": (jax.random.normal(ks[6], (4 * d_model, d_model)) * s).astype(jnp.float32),
        "b_proj": (jax.random.normal(ks[7], (1, d_model)) * s).astype(jnp.float32),
    }


def reference_block(x, p, n_head):
    """Pure-JAX f32 reference mirroring torch semantics (attn_mask=None)."""
    N, L, D = x.shape
    Dh = D // n_head

    def ln(h, g, b):
        mu = jnp.mean(h, axis=-1, keepdims=True)
        var = jnp.mean((h - mu) ** 2, axis=-1, keepdims=True)
        return (h - mu) / jnp.sqrt(var + 1e-5) * g[0] + b[0]

    h = ln(x, p["ln1_g"], p["ln1_b"])
    qkv = h @ p["w_qkv"] + p["b_qkv"][0]
    q, k, v = qkv[..., :D], qkv[..., D:2 * D], qkv[..., 2 * D:]
    q = q.reshape(N, L, n_head, Dh).transpose(0, 2, 1, 3) / math.sqrt(Dh)
    k = k.reshape(N, L, n_head, Dh).transpose(0, 2, 1, 3)
    v = v.reshape(N, L, n_head, Dh).transpose(0, 2, 1, 3)
    s = jnp.einsum("nhqd,nhkd->nhqk", q, k)
    pattn = jax.nn.softmax(s, axis=-1)
    a = jnp.einsum("nhqk,nhkd->nhqd", pattn, v).transpose(0, 2, 1, 3).reshape(N, L, D)
    a = a @ p["w_out"] + p["b_out"][0]
    x1 = x + a
    h2 = ln(x1, p["ln2_g"], p["ln2_b"])
    fc = h2 @ p["w_fc"] + p["b_fc"][0]
    fc = fc * jax.nn.sigmoid(1.702 * fc)
    return x1 + fc @ p["w_proj"] + p["b_proj"][0]


if __name__ == "__main__":
    d_model, n_head = 32, 4
    N, L = 2, 8

    key = jax.random.PRNGKey(0)
    kx, kp = jax.random.split(key)
    x = jax.random.normal(kx, (N, L, d_model), dtype=jnp.float32)
    params = init_params(kp, d_model, n_head)

    out = residual_attention_block(x, params, n_head)
    out = jax.block_until_ready(out)

    ref = reference_block(x, params, n_head)
    assert out.shape == (N, L, d_model)
    max_err = float(jnp.max(jnp.abs(out - ref)))
    # bf16 MXU matmuls with f32 accumulation -> relaxed tolerance vs f32 reference.
    assert jnp.allclose(out, ref, atol=2e-2, rtol=2e-2), f"mismatch vs reference (max abs err {max_err})"

    print("KERNEL_OK")
</pallas_src>

<mosaic_0001>
module attributes {stable_mosaic.version = 11 : i64} {
  func.func @_block_kernel(%arg0: i32, %arg1: i32, %arg2: memref<1x8x32xf32, #tpu.memory_space<vmem>>, %arg3: memref<32x96xbf16, #tpu.memory_space<vmem>>, %arg4: memref<1x96xf32, #tpu.memory_space<vmem>>, %arg5: memref<32x32xbf16, #tpu.memory_space<vmem>>, %arg6: memref<1x32xf32, #tpu.memory_space<vmem>>, %arg7: memref<1x32xf32, #tpu.memory_space<vmem>>, %arg8: memref<1x32xf32, #tpu.memory_space<vmem>>, %arg9: memref<1x32xf32, #tpu.memory_space<vmem>>, %arg10: memref<1x32xf32, #tpu.memory_space<vmem>>, %arg11: memref<32x128xbf16, #tpu.memory_space<vmem>>, %arg12: memref<1x128xf32, #tpu.memory_space<vmem>>, %arg13: memref<128x32xbf16, #tpu.memory_space<vmem>>, %arg14: memref<1x32xf32, #tpu.memory_space<vmem>>, %arg15: memref<1x8x32xf32, #tpu.memory_space<vmem>>, %arg16: memref<8x32xbf16, #tpu.memory_space<vmem>>, %arg17: memref<8x32xbf16, #tpu.memory_space<vmem>>) attributes {dimension_semantics = [#tpu.dimension_semantics<parallel>, #tpu.dimension_semantics<arbitrary>], iteration_bounds = array<i64: 2, 1>, scalar_prefetch = 0 : i64, scratch_operands = 2 : i64, tpu.core_type = #tpu.core_type<tc>, window_params = [{transform_indices = @transform_0, window_bounds = array<i64: 1, 8, 32>}, {pipeline_mode = #tpu.pipeline_mode<synchronous>, transform_indices = @transform_1, window_bounds = array<i64: 32, 96>}, {pipeline_mode = #tpu.pipeline_mode<synchronous>, transform_indices = @transform_2, window_bounds = array<i64: 1, 96>}, {pipeline_mode = #tpu.pipeline_mode<synchronous>, transform_indices = @transform_3, window_bounds = array<i64: 32, 32>}, {pipeline_mode = #tpu.pipeline_mode<synchronous>, transform_indices = @transform_4, window_bounds = array<i64: 1, 32>}, {pipeline_mode = #tpu.pipeline_mode<synchronous>, transform_indices = @transform_5, window_bounds = array<i64: 1, 32>}, {pipeline_mode = #tpu.pipeline_mode<synchronous>, transform_indices = @transform_6, window_bounds = array<i64: 1, 32>}, {pipeline_mode = #tpu.pipeline_mode<synchronous>, transform_indices = @transform_7, window_bounds = array<i64: 1, 32>}, {pipeline_mode = #tpu.pipeline_mode<synchronous>, transform_indices = @transform_8, window_bounds = array<i64: 1, 32>}, {pipeline_mode = #tpu.pipeline_mode<synchronous>, transform_indices = @transform_9, window_bounds = array<i64: 32, 128>}, {pipeline_mode = #tpu.pipeline_mode<synchronous>, transform_indices = @transform_10, window_bounds = array<i64: 1, 128>}, {pipeline_mode = #tpu.pipeline_mode<synchronous>, transform_indices = @transform_11, window_bounds = array<i64: 128, 32>}, {pipeline_mode = #tpu.pipeline_mode<synchronous>, transform_indices = @transform_12, window_bounds = array<i64: 1, 32>}, {transform_indices = @transform_13, window_bounds = array<i64: 1, 8, 32>}]} {
    %c0_i32 = arith.constant 0 : i32
    %0 = arith.cmpi eq, %arg1, %c0_i32 : i32
    %1 = arith.extui %0 : i1 to i32
    %c0_i32_0 = arith.constant 0 : i32
    %2 = arith.cmpi ne, %1, %c0_i32_0 : i32
    scf.if %2 {
      %c0_84 = arith.constant 0 : index
      %c0_85 = arith.constant 0 : index
      %c0_86 = arith.constant 0 : index
      %190 = vector.load %arg2[%c0_84, %c0_85, %c0_86] : memref<1x8x32xf32, #tpu.memory_space<vmem>>, vector<1x8x32xf32>
      %191 = vector.shape_cast %190 : vector<1x8x32xf32> to vector<8x32xf32>
      %c0_87 = arith.constant 0 : index
      %c0_88 = arith.constant 0 : index
      %192 = vector.load %arg7[%c0_87, %c0_88] : memref<1x32xf32, #tpu.memory_space<vmem>>, vector<1x32xf32>
      %193 = vector.shape_cast %192 : vector<1x32xf32> to vector<32xf32>
      %c0_89 = arith.constant 0 : index
      %c0_90 = arith.constant 0 : index
      %194 = vector.load %arg8[%c0_89, %c0_90] : memref<1x32xf32, #tpu.memory_space<vmem>>, vector<1x32xf32>
      %195 = vector.shape_cast %194 : vector<1x32xf32> to vector<32xf32>
      %cst_91 = arith.constant dense<0.000000e+00> : vector<8xf32>
      %196 = vector.multi_reduction <add>, %191, %cst_91 [1] : vector<8x32xf32> to vector<8xf32>
      %197 = vector.shape_cast %196 : vector<8xf32> to vector<8x1xf32>
      %cst_92 = arith.constant 3.200000e+01 : f32
      %198 = vector.broadcast %cst_92 : f32 to vector<8x1xf32>
      %199 = arith.divf %197, %198 : vector<8x1xf32>
      %200 = vector.broadcast %199 : vector<8x1xf32> to vector<8x32xf32>
      %201 = arith.subf %191, %200 : vector<8x32xf32>
      %202 = arith.mulf %201, %201 : vector<8x32xf32>
      %cst_93 = arith.constant dense<0.000000e+00> : vector<8xf32>
      %203 = vector.multi_reduction <add>, %202, %cst_93 [1] : vector<8x32xf32> to vector<8xf32>
      %204 = vector.shape_cast %203 : vector<8xf32> to vector<8x1xf32>
      %cst_94 = arith.constant 3.200000e+01 : f32
      %205 = vector.broadcast %cst_94 : f32 to vector<8x1xf32>
      %206 = arith.divf %204, %205 : vector<8x1xf32>
      %207 = vector.broadcast %199 : vector<8x1xf32> to vector<8x32xf32>
      %208 = arith.subf %191, %207 : vector<8x32xf32>
      %cst_95 = arith.constant 9.99999974E-6 : f32
      %209 = vector.broadcast %cst_95 : f32 to vector<8x1xf32>
      %210 = arith.addf %206, %209 : vector<8x1xf32>
      %211 = math.rsqrt %210 : vector<8x1xf32>
      %212 = vector.broadcast %211 : vector<8x1xf32> to vector<8x32xf32>
      %213 = arith.mulf %208, %212 : vector<8x32xf32>
      %214 = vector.shape_cast %193 : vector<32xf32> to vector<1x32xf32>
      %215 = vector.broadcast %214 : vector<1x32xf32> to vector<8x32xf32>
      %216 = arith.mulf %213, %215 : vector<8x32xf32>
      %217 = vector.shape_cast %195 : vector<32xf32> to vector<1x32xf32>
      %218 = vector.broadcast %217 : vector<1x32xf32> to vector<8x32xf32>
      %219 = arith.addf %216, %218 : vector<8x32xf32>
      %220 = arith.truncf %219 : vector<8x32xf32> to vector<8x32xbf16>
      %c0_96 = arith.constant 0 : index
      %c32 = arith.constant 32 : index
      %221 = vector.load %arg3[%c0_96, %c32] : memref<32x96xbf16, #tpu.memory_space<vmem>>, vector<32x64xbf16>
      %cst_97 = arith.constant dense<0.000000e+00> : vector<8x64xf32>
      %222 = tpu.matmul %220, %221, %cst_97 {dimension_numbers = #tpu.dot_dimension_numbers<[1], [0], [0], [1], [0, 0, 1, 1], [], []>} : vector<8x32xbf16>, vector<32x64xbf16>, vector<8x64xf32> -> vector<8x64xf32>
      %c0_98 = arith.constant 0 : index
      %c32_99 = arith.constant 32 : index
      %223 = vector.load %arg4[%c0_98, %c32_99] : memref<1x96xf32, #tpu.memory_space<vmem>>, vector<1x64xf32>
      %224 = vector.shape_cast %223 : vector<1x64xf32> to vector<64xf32>
      %225 = vector.shape_cast %224 : vector<64xf32> to vector<1x64xf32>
      %226 = vector.broadcast %225 : vector<1x64xf32> to vector<8x64xf32>
      %227 = arith.addf %222, %226 : vector<8x64xf32>
      %228 = vector.extract_strided_slice %227 {offsets = [0, 0], sizes = [8, 32], strides = [1, 1]} : vector<8x64xf32> to vector<8x32xf32>
      %229 = arith.truncf %228 : vector<8x32xf32> to vector<8x32xbf16>
      %c0_100 = arith.constant 0 : index
      %c0_101 = arith.constant 0 : index
      %230 = vector.load %arg16[%c0_100, %c0_101] : memref<8x32xbf16, #tpu.memory_space<vmem>>, vector<8x32xbf16>
      tpu.vector_store %arg16[%c0_100, %c0_101], %229 {strides = array<i32>} : memref<8x32xbf16, #tpu.memory_space<vmem>>, vector<8x32xbf16>,
      %231 = vector.extract_strided_slice %227 {offsets = [0, 32], sizes = [8, 32], strides = [1, 1]} : vector<8x64xf32> to vector<8x32xf32>
      %232 = arith.truncf %231 : vector<8x32xf32> to vector<8x32xbf16>
      %c0_102 = arith.constant 0 : index
      %c0_103 = arith.constant 0 : index
      %233 = vector.load %arg17[%c0_102, %c0_103] : memref<8x32xbf16, #tpu.memory_space<vmem>>, vector<8x32xbf16>
      tpu.vector_store %arg17[%c0_102, %c0_103], %232 {strides = array<i32>} : memref<8x32xbf16, #tpu.memory_space<vmem>>, vector<8x32xbf16>,
    } else {
    }
    %c8_i32 = arith.constant 8 : i32
    %3 = arith.muli %arg1, %c8_i32 : i32
    %4 = tpu.assume_multiple %3, 8 : i32
    %c0 = arith.constant 0 : index
    %5 = arith.index_cast %4 : i32 to index
    %c0_1 = arith.constant 0 : index
    %6 = vector.load %arg2[%c0, %5, %c0_1] : memref<1x8x32xf32, #tpu.memory_space<vmem>>, vector<1x8x32xf32>
    %7 = vector.shape_cast %6 : vector<1x8x32xf32> to vector<8x32xf32>
    %c0_2 = arith.constant 0 : index
    %c0_3 = arith.constant 0 : index
    %8 = vector.load %arg7[%c0_2, %c0_3] : memref<1x32xf32, #tpu.memory_space<vmem>>, vector<1x32xf32>
    %9 = vector.shape_cast %8 : vector<1x32xf32> to vector<32xf32>
    %c0_4 = arith.constant 0 : index
    %c0_5 = arith.constant 0 : index
    %10 = vector.load %arg8[%c0_4, %c0_5] : memref<1x32xf32, #tpu.memory_space<vmem>>, vector<1x32xf32>
    %11 = vector.shape_cast %10 : vector<1x32xf32> to vector<32xf32>
    %cst = arith.constant dense<0.000000e+00> : vector<8xf32>
    %12 = vector.multi_reduction <add>, %7, %cst [1] : vector<8x32xf32> to vector<8xf32>
    %13 = vector.shape_cast %12 : vector<8xf32> to vector<8x1xf32>
    %cst_6 = arith.constant 3.200000e+01 : f32
    %14 = vector.broadcast %cst_6 : f32 to vector<8x1xf32>
    %15 = arith.divf %13, %14 : vector<8x1xf32>
    %16 = vector.broadcast %15 : vector<8x1xf32> to vector<8x32xf32>
    %17 = arith.subf %7, %16 : vector<8x32xf32>
    %18 = arith.mulf %17, %17 : vector<8x32xf32>
    %cst_7 = arith.constant dense<0.000000e+00> : vector<8xf32>
    %19 = vector.multi_reduction <add>, %18, %cst_7 [1] : vector<8x32xf32> to vector<8xf32>
    %20 = vector.shape_cast %19 : vector<8xf32> to vector<8x1xf32>
    %cst_8 = arith.constant 3.200000e+01 : f32
    %21 = vector.broadcast %cst_8 : f32 to vector<8x1xf32>
    %22 = arith.divf %20, %21 : vector<8x1xf32>
    %23 = vector.broadcast %15 : vector<8x1xf32> to vector<8x32xf32>
    %24 = arith.subf %7, %23 : vector<8x32xf32>
    %cst_9 = arith.constant 9.99999974E-6 : f32
    %25 = vector.broadcast %cst_9 : f32 to vector<8x1xf32>
    %26 = arith.addf %22, %25 : vector<8x1xf32>
    %27 = math.rsqrt %26 : vector<8x1xf32>
    %28 = vector.broadcast %27 : vector<8x1xf32> to vector<8x32xf32>
    %29 = arith.mulf %24, %28 : vector<8x32xf32>
    %30 = vector.shape_cast %9 : vector<32xf32> to vector<1x32xf32>
    %31 = vector.broadcast %30 : vector<1x32xf32> to vector<8x32xf32>
    %32 = arith.mulf %29, %31 : vector<8x32xf32>
    %33 = vector.shape_cast %11 : vector<32xf32> to vector<1x32xf32>
    %34 = vector.broadcast %33 : vector<1x32xf32> to vector<8x32xf32>
    %35 = arith.addf %32, %34 : vector<8x32xf32>
    %36 = arith.truncf %35 : vector<8x32xf32> to vector<8x32xbf16>
    %c0_10 = arith.constant 0 : index
    %c0_11 = arith.constant 0 : index
    %37 = vector.load %arg3[%c0_10, %c0_11] : memref<32x96xbf16, #tpu.memory_space<vmem>>, vector<32x32xbf16>
    %cst_12 = arith.constant dense<0.000000e+00> : vector<8x32xf32>
    %38 = tpu.matmul %36, %37, %cst_12 {dimension_numbers = #tpu.dot_dimension_numbers<[1], [0], [0], [1], [0, 0, 1, 1], [], []>} : vector<8x32xbf16>, vector<32x32xbf16>, vector<8x32xf32> -> vector<8x32xf32>
    %c0_13 = arith.constant 0 : index
    %c0_14 = arith.constant 0 : index
    %39 = vector.load %arg4[%c0_13, %c0_14] : memref<1x96xf32, #tpu.memory_space<vmem>>, vector<1x32xf32>
    %40 = vector.shape_cast %39 : vector<1x32xf32> to vector<32xf32>
    %41 = vector.shape_cast %40 : vector<32xf32> to vector<1x32xf32>
    %42 = vector.broadcast %41 : vector<1x32xf32> to vector<8x32xf32>
    %43 = arith.addf %38, %42 : vector<8x32xf32>
    %44 = arith.truncf %43 : vector<8x32xf32> to vector<8x32xbf16>
    %cst_15 = arith.constant 0.000000e+00 : f32
    %45 = vector.broadcast %cst_15 : f32 to vector<8x32xf32>
    %46 = vector.extract_strided_slice %44 {offsets = [0, 0], sizes = [8, 8], strides = [1, 1]} : vector<8x32xbf16> to vector<8x8xbf16>
    %c0_16 = arith.constant 0 : index
    %c0_17 = arith.constant 0 : index
    %47 = vector.load %arg16[%c0_16, %c0_17] : memref<8x32xbf16, #tpu.memory_space<vmem>>, vector<8x8xbf16>
    %c0_18 = arith.constant 0 : index
    %c0_19 = arith.constant 0 : index
    %48 = vector.load %arg17[%c0_18, %c0_19] : memref<8x32xbf16, #tpu.memory_space<vmem>>, vector<8x8xbf16>
    "tpu.trace_start"() <{level = 10 : i32, message = "qd,kd->qk"}> : () -> ()
    %cst_20 = arith.constant dense<0.000000e+00> : vector<8x8xf32>
    %49 = tpu.matmul %46, %47, %cst_20 {dimension_numbers = #tpu.dot_dimension_numbers<[1], [1], [0], [0], [0, 0, 1, 0], [], []>} : vector<8x8xbf16>, vector<8x8xbf16>, vector<8x8xf32> -> vector<8x8xf32>
    "tpu.trace_stop"() : () -> ()
    %cst_21 = arith.constant dense<0xFF800000> : vector<8xf32>
    %50 = vector.multi_reduction <maximumf>, %49, %cst_21 [1] : vector<8x8xf32> to vector<8xf32>
    %51 = vector.shape_cast %50 : vector<8xf32> to vector<8x1xf32>
    %52 = vector.broadcast %51 : vector<8x1xf32> to vector<8x8xf32>
    %53 = arith.subf %49, %52 : vector<8x8xf32>
    %54 = math.exp %53 : vector<8x8xf32>
    %cst_22 = arith.constant dense<0.000000e+00> : vector<8xf32>
    %55 = vector.multi_reduction <add>, %54, %cst_22 [1] : vector<8x8xf32> to vector<8xf32>
    %56 = vector.shape_cast %55 : vector<8xf32> to vector<8x1xf32>
    %57 = tpu.reciprocal %56 {approx = true} : vector<8x1xf32> -> vector<8x1xf32>
    %58 = vector.broadcast %57 : vector<8x1xf32> to vector<8x8xf32>
    %59 = arith.mulf %54, %58 : vector<8x8xf32>
    %60 = arith.truncf %59 : vector<8x8xf32> to vector<8x8xbf16>
    %cst_23 = arith.constant dense<0.000000e+00> : vector<8x8xf32>
    %61 = tpu.matmul %60, %48, %cst_23 {dimension_numbers = #tpu.dot_dimension_numbers<[1], [0], [0], [1], [0, 0, 1, 1], [], []>} : vector<8x8xbf16>, vector<8x8xbf16>, vector<8x8xf32> -> vector<8x8xf32>
    %62 = arith.truncf %61 : vector<8x8xf32> to vector<8x8xbf16>
    %c0_24 = arith.constant 0 : index
    %c0_25 = arith.constant 0 : index
    %63 = vector.load %arg5[%c0_24, %c0_25] : memref<32x32xbf16, #tpu.memory_space<vmem>>, vector<8x32xbf16>
    %cst_26 = arith.constant dense<0.000000e+00> : vector<8x32xf32>
    %64 = tpu.matmul %62, %63, %cst_26 {dimension_numbers = #tpu.dot_dimension_numbers<[1], [0], [0], [1], [0, 0, 1, 1], [], []>} : vector<8x8xbf16>, vector<8x32xbf16>, vector<8x32xf32> -> vector<8x32xf32>
    %65 = arith.addf %45, %64 : vector<8x32xf32>
    %66 = vector.extract_strided_slice %44 {offsets = [0, 8], sizes = [8, 8], strides = [1, 1]} : vector<8x32xbf16> to vector<8x8xbf16>
    %c0_27 = arith.constant 0 : index
    %c8 = arith.constant 8 : index
    %67 = vector.load %arg16[%c0_27, %c8] : memref<8x32xbf16, #tpu.memory_space<vmem>>, vector<8x8xbf16>
    %c0_28 = arith.constant 0 : index
    %c8_29 = arith.constant 8 : index
    %68 = vector.load %arg17[%c0_28, %c8_29] : memref<8x32xbf16, #tpu.memory_space<vmem>>, vector<8x8xbf16>
    "tpu.trace_start"() <{level = 10 : i32, message = "qd,kd->qk"}> : () -> ()
    %cst_30 = arith.constant dense<0.000000e+00> : vector<8x8xf32>
    %69 = tpu.matmul %66, %67, %cst_30 {dimension_numbers = #tpu.dot_dimension_numbers<[1], [1], [0], [0], [0, 0, 1, 0], [], []>} : vector<8x8xbf16>, vector<8x8xbf16>, vector<8x8xf32> -> vector<8x8xf32>
    "tpu.trace_stop"() : () -> ()
    %cst_31 = arith.constant dense<0xFF800000> : vector<8xf32>
    %70 = vector.multi_reduction <maximumf>, %69, %cst_31 [1] : vector<8x8xf32> to vector<8xf32>
    %71 = vector.shape_cast %70 : vector<8xf32> to vector<8x1xf32>
    %72 = vector.broadcast %71 : vector<8x1xf32> to vector<8x8xf32>
    %73 = arith.subf %69, %72 : vector<8x8xf32>
    %74 = math.exp %73 : vector<8x8xf32>
    %cst_32 = arith.constant dense<0.000000e+00> : vector<8xf32>
    %75 = vector.multi_reduction <add>, %74, %cst_32 [1] : vector<8x8xf32> to vector<8xf32>
    %76 = vector.shape_cast %75 : vector<8xf32> to vector<8x1xf32>
    %77 = tpu.reciprocal %76 {approx = true} : vector<8x1xf32> -> vector<8x1xf32>
    %78 = vector.broadcast %77 : vector<8x1xf32> to vector<8x8xf32>
    %79 = arith.mulf %74, %78 : vector<8x8xf32>
    %80 = arith.truncf %79 : vector<8x8xf32> to vector<8x8xbf16>
    %cst_33 = arith.constant dense<0.000000e+00> : vector<8x8xf32>
    %81 = tpu.matmul %80, %68, %cst_33 {dimension_numbers = #tpu.dot_dimension_numbers<[1], [0], [0], [1], [0, 0, 1, 1], [], []>} : vector<8x8xbf16>, vector<8x8xbf16>, vector<8x8xf32> -> vector<8x8xf32>
    %82 = arith.truncf %81 : vector<8x8xf32> to vector<8x8xbf16>
    %c8_34 = arith.constant 8 : index
    %c0_35 = arith.constant 0 : index
    %83 = vector.load %arg5[%c8_34, %c0_35] : memref<32x32xbf16, #tpu.memory_space<vmem>>, vector<8x32xbf16>
    %cst_36 = arith.constant dense<0.000000e+00> : vector<8x32xf32>
    %84 = tpu.matmul %82, %83, %cst_36 {dimension_numbers = #tpu.dot_dimension_numbers<[1], [0], [0], [1], [0, 0, 1, 1], [], []>} : vector<8x8xbf16>, vector<8x32xbf16>, vector<8x32xf32> -> vector<8x32xf32>
    %85 = arith.addf %65, %84 : vector<8x32xf32>
    %86 = vector.extract_strided_slice %44 {offsets = [0, 16], sizes = [8, 8], strides = [1, 1]} : vector<8x32xbf16> to vector<8x8xbf16>
    %c0_37 = arith.constant 0 : index
    %c16 = arith.constant 16 : index
    %87 = vector.load %arg16[%c0_37, %c16] : memref<8x32xbf16, #tpu.memory_space<vmem>>, vector<8x8xbf16>
    %c0_38 = arith.constant 0 : index
    %c16_39 = arith.constant 16 : index
    %88 = vector.load %arg17[%c0_38, %c16_39] : memref<8x32xbf16, #tpu.memory_space<vmem>>, vector<8x8xbf16>
    "tpu.trace_start"() <{level = 10 : i32, message = "qd,kd->qk"}> : () -> ()
    %cst_40 = arith.constant dense<0.000000e+00> : vector<8x8xf32>
    %89 = tpu.matmul %86, %87, %cst_40 {dimension_numbers = #tpu.dot_dimension_numbers<[1], [1], [0], [0], [0, 0, 1, 0], [], []>} : vector<8x8xbf16>, vector<8x8xbf16>, vector<8x8xf32> -> vector<8x8xf32>
    "tpu.trace_stop"() : () -> ()
    %cst_41 = arith.constant dense<0xFF800000> : vector<8xf32>
    %90 = vector.multi_reduction <maximumf>, %89, %cst_41 [1] : vector<8x8xf32> to vector<8xf32>
    %91 = vector.shape_cast %90 : vector<8xf32> to vector<8x1xf32>
    %92 = vector.broadcast %91 : vector<8x1xf32> to vector<8x8xf32>
    %93 = arith.subf %89, %92 : vector<8x8xf32>
    %94 = math.exp %93 : vector<8x8xf32>
    %cst_42 = arith.constant dense<0.000000e+00> : vector<8xf32>
    %95 = vector.multi_reduction <add>, %94, %cst_42 [1] : vector<8x8xf32> to vector<8xf32>
    %96 = vector.shape_cast %95 : vector<8xf32> to vector<8x1xf32>
    %97 = tpu.reciprocal %96 {approx = true} : vector<8x1xf32> -> vector<8x1xf32>
    %98 = vector.broadcast %97 : vector<8x1xf32> to vector<8x8xf32>
    %99 = arith.mulf %94, %98 : vector<8x8xf32>
    %100 = arith.truncf %99 : vector<8x8xf32> to vector<8x8xbf16>
    %cst_43 = arith.constant dense<0.000000e+00> : vector<8x8xf32>
    %101 = tpu.matmul %100, %88, %cst_43 {dimension_numbers = #tpu.dot_dimension_numbers<[1], [0], [0], [1], [0, 0, 1, 1], [], []>} : vector<8x8xbf16>, vector<8x8xbf16>, vector<8x8xf32> -> vector<8x8xf32>
    %102 = arith.truncf %101 : vector<8x8xf32> to vector<8x8xbf16>
    %c16_44 = arith.constant 16 : index
    %c0_45 = arith.constant 0 : index
    %103 = vector.load %arg5[%c16_44, %c0_45] : memref<32x32xbf16, #tpu.memory_space<vmem>>, vector<8x32xbf16>
    %cst_46 = arith.constant dense<0.000000e+00> : vector<8x32xf32>
    %104 = tpu.matmul %102, %103, %cst_46 {dimension_numbers = #tpu.dot_dimension_numbers<[1], [0], [0], [1], [0, 0, 1, 1], [], []>} : vector<8x8xbf16>, vector<8x32xbf16>, vector<8x32xf32> -> vector<8x32xf32>
    %105 = arith.addf %85, %104 : vector<8x32xf32>
    %106 = vector.extract_strided_slice %44 {offsets = [0, 24], sizes = [8, 8], strides = [1, 1]} : vector<8x32xbf16> to vector<8x8xbf16>
    %c0_47 = arith.constant 0 : index
    %c24 = arith.constant 24 : index
    %107 = vector.load %arg16[%c0_47, %c24] : memref<8x32xbf16, #tpu.memory_space<vmem>>, vector<8x8xbf16>
    %c0_48 = arith.constant 0 : index
    %c24_49 = arith.constant 24 : index
    %108 = vector.load %arg17[%c0_48, %c24_49] : memref<8x32xbf16, #tpu.memory_space<vmem>>, vector<8x8xbf16>
    "tpu.trace_start"() <{level = 10 : i32, message = "qd,kd->qk"}> : () -> ()
    %cst_50 = arith.constant dense<0.000000e+00> : vector<8x8xf32>
    %109 = tpu.matmul %106, %107, %cst_50 {dimension_numbers = #tpu.dot_dimension_numbers<[1], [1], [0], [0], [0, 0, 1, 0], [], []>} : vector<8x8xbf16>, vector<8x8xbf16>, vector<8x8xf32> -> vector<8x8xf32>
    "tpu.trace_stop"() : () -> ()
    %cst_51 = arith.constant dense<0xFF800000> : vector<8xf32>
    %110 = vector.multi_reduction <maximumf>, %109, %cst_51 [1] : vector<8x8xf32> to vector<8xf32>
    %111 = vector.shape_cast %110 : vector<8xf32> to vector<8x1xf32>
    %112 = vector.broadcast %111 : vector<8x1xf32> to vector<8x8xf32>
    %113 = arith.subf %109, %112 : vector<8x8xf32>
    %114 = math.exp %113 : vector<8x8xf32>
    %cst_52 = arith.constant dense<0.000000e+00> : vector<8xf32>
    %115 = vector.multi_reduction <add>, %114, %cst_52 [1] : vector<8x8xf32> to vector<8xf32>
    %116 = vector.shape_cast %115 : vector<8xf32> to vector<8x1xf32>
    %117 = tpu.reciprocal %116 {approx = true} : vector<8x1xf32> -> vector<8x1xf32>
    %118 = vector.broadcast %117 : vector<8x1xf32> to vector<8x8xf32>
    %119 = arith.mulf %114, %118 : vector<8x8xf32>
    %120 = arith.truncf %119 : vector<8x8xf32> to vector<8x8xbf16>
    %cst_53 = arith.constant dense<0.000000e+00> : vector<8x8xf32>
    %121 = tpu.matmul %120, %108, %cst_53 {dimension_numbers = #tpu.dot_dimension_numbers<[1], [0], [0], [1], [0, 0, 1, 1], [], []>} : vector<8x8xbf16>, vector<8x8xbf16>, vector<8x8xf32> -> vector<8x8xf32>
    %122 = arith.truncf %121 : vector<8x8xf32> to vector<8x8xbf16>
    %c24_54 = arith.constant 24 : index
    %c0_55 = arith.constant 0 : index
    %123 = vector.load %arg5[%c24_54, %c0_55] : memref<32x32xbf16, #tpu.memory_space<vmem>>, vector<8x32xbf16>
    %cst_56 = arith.constant dense<0.000000e+00> : vector<8x32xf32>
    %124 = tpu.matmul %122, %123, %cst_56 {dimension_numbers = #tpu.dot_dimension_numbers<[1], [0], [0], [1], [0, 0, 1, 1], [], []>} : vector<8x8xbf16>, vector<8x32xbf16>, vector<8x32xf32> -> vector<8x32xf32>
    %125 = arith.addf %105, %124 : vector<8x32xf32>
    %126 = arith.addf %7, %125 : vector<8x32xf32>
    %c0_57 = arith.constant 0 : index
    %c0_58 = arith.constant 0 : index
    %127 = vector.load %arg6[%c0_57, %c0_58] : memref<1x32xf32, #tpu.memory_space<vmem>>, vector<1x32xf32>
    %128 = vector.shape_cast %127 : vector<1x32xf32> to vector<32xf32>
    %129 = vector.shape_cast %128 : vector<32xf32> to vector<1x32xf32>
    %130 = vector.broadcast %129 : vector<1x32xf32> to vector<8x32xf32>
    %131 = arith.addf %126, %130 : vector<8x32xf32>
    %c0_59 = arith.constant 0 : index
    %c0_60 = arith.constant 0 : index
    %132 = vector.load %arg9[%c0_59, %c0_60] : memref<1x32xf32, #tpu.memory_space<vmem>>, vector<1x32xf32>
    %133 = vector.shape_cast %132 : vector<1x32xf32> to vector<32xf32>
    %c0_61 = arith.constant 0 : index
    %c0_62 = arith.constant 0 : index
    %134 = vector.load %arg10[%c0_61, %c0_62] : memref<1x32xf32, #tpu.memory_space<vmem>>, vector<1x32xf32>
    %135 = vector.shape_cast %134 : vector<1x32xf32> to vector<32xf32>
    %cst_63 = arith.constant dense<0.000000e+00> : vector<8xf32>
    %136 = vector.multi_reduction <add>, %131, %cst_63 [1] : vector<8x32xf32> to vector<8xf32>
    %137 = vector.shape_cast %136 : vector<8xf32> to vector<8x1xf32>
    %cst_64 = arith.constant 3.200000e+01 : f32
    %138 = vector.broadcast %cst_64 : f32 to vector<8x1xf32>
    %139 = arith.divf %137, %138 : vector<8x1xf32>
    %140 = vector.broadcast %139 : vector<8x1xf32> to vector<8x32xf32>
    %141 = arith.subf %131, %140 : vector<8x32xf32>
    %142 = arith.mulf %141, %141 : vector<8x32xf32>
    %cst_65 = arith.constant dense<0.000000e+00> : vector<8xf32>
    %143 = vector.multi_reduction <add>, %142, %cst_65 [1] : vector<8x32xf32> to vector<8xf32>
    %144 = vector.shape_cast %143 : vector<8xf32> to vector<8x1xf32>
    %cst_66 = arith.constant 3.200000e+01 : f32
    %145 = vector.broadcast %cst_66 : f32 to vector<8x1xf32>
    %146 = arith.divf %144, %145 : vector<8x1xf32>
    %147 = vector.broadcast %139 : vector<8x1xf32> to vector<8x32xf32>
    %148 = arith.subf %131, %147 : vector<8x32xf32>
    %cst_67 = arith.constant 9.99999974E-6 : f32
    %149 = vector.broadcast %cst_67 : f32 to vector<8x1xf32>
    %150 = arith.addf %146, %149 : vector<8x1xf32>
    %151 = math.rsqrt %150 : vector<8x1xf32>
    %152 = vector.broadcast %151 : vector<8x1xf32> to vector<8x32xf32>
    %153 = arith.mulf %148, %152 : vector<8x32xf32>
    %154 = vector.shape_cast %133 : vector<32xf32> to vector<1x32xf32>
    %155 = vector.broadcast %154 : vector<1x32xf32> to vector<8x32xf32>
    %156 = arith.mulf %153, %155 : vector<8x32xf32>
    %157 = vector.shape_cast %135 : vector<32xf32> to vector<1x32xf32>
    %158 = vector.broadcast %157 : vector<1x32xf32> to vector<8x32xf32>
    %159 = arith.addf %156, %158 : vector<8x32xf32>
    %160 = arith.truncf %159 : vector<8x32xf32> to vector<8x32xbf16>
    %cst_68 = arith.constant 0.000000e+00 : f32
    %161 = vector.broadcast %cst_68 : f32 to vector<8x32xf32>
    %c0_69 = arith.constant 0 : index
    %c0_70 = arith.constant 0 : index
    %162 = vector.load %arg11[%c0_69, %c0_70] : memref<32x128xbf16, #tpu.memory_space<vmem>>, vector<32x128xbf16>
    %cst_71 = arith.constant dense<0.000000e+00> : vector<8x128xf32>
    %163 = tpu.matmul %160, %162, %cst_71 {dimension_numbers = #tpu.dot_dimension_numbers<[1], [0], [0], [1], [0, 0, 1, 1], [], []>} : vector<8x32xbf16>, vector<32x128xbf16>, vector<8x128xf32> -> vector<8x128xf32>
    %c0_72 = arith.constant 0 : index
    %c0_73 = arith.constant 0 : index
    %164 = vector.load %arg12[%c0_72, %c0_73] : memref<1x128xf32, #tpu.memory_space<vmem>>, vector<1x128xf32>
    %165 = vector.shape_cast %164 : vector<1x128xf32> to vector<128xf32>
    %166 = vector.shape_cast %165 : vector<128xf32> to vector<1x128xf32>
    %167 = vector.broadcast %166 : vector<1x128xf32> to vector<8x128xf32>
    %168 = arith.addf %163, %167 : vector<8x128xf32>
    %cst_74 = arith.constant 1.702000e+00 : f32
    %169 = vector.broadcast %cst_74 : f32 to vector<8x128xf32>
    %170 = arith.mulf %169, %168 : vector<8x128xf32>
    %171 = arith.negf %170 : vector<8x128xf32>
    %172 = math.exp %171 : vector<8x128xf32>
    %cst_75 = arith.constant 1.000000e+00 : f32
    %173 = vector.broadcast %cst_75 : f32 to vector<8x128xf32>
    %174 = arith.addf %173, %172 : vector<8x128xf32>
    %175 = arith.divf %173, %174 : vector<8x128xf32>
    %176 = arith.mulf %168, %175 : vector<8x128xf32>
    %177 = arith.truncf %176 : vector<8x128xf32> to vector<8x128xbf16>
    %c0_76 = arith.constant 0 : index
    %c0_77 = arith.constant 0 : index
    %178 = vector.load %arg13[%c0_76, %c0_77] : memref<128x32xbf16, #tpu.memory_space<vmem>>, vector<128x32xbf16>
    %cst_78 = arith.constant dense<0.000000e+00> : vector<8x32xf32>
    %179 = tpu.matmul %177, %178, %cst_78 {dimension_numbers = #tpu.dot_dimension_numbers<[1], [0], [0], [1], [0, 0, 1, 1], [], []>} : vector<8x128xbf16>, vector<128x32xbf16>, vector<8x32xf32> -> vector<8x32xf32>
    %180 = arith.addf %161, %179 : vector<8x32xf32>
    %181 = arith.addf %131, %180 : vector<8x32xf32>
    %c0_79 = arith.constant 0 : index
    %c0_80 = arith.constant 0 : index
    %182 = vector.load %arg14[%c0_79, %c0_80] : memref<1x32xf32, #tpu.memory_space<vmem>>, vector<1x32xf32>
    %183 = vector.shape_cast %182 : vector<1x32xf32> to vector<32xf32>
    %184 = vector.shape_cast %183 : vector<32xf32> to vector<1x32xf32>
    %185 = vector.broadcast %184 : vector<1x32xf32> to vector<8x32xf32>
    %186 = arith.addf %181, %185 : vector<8x32xf32>
    %c0_81 = arith.constant 0 : index
    %c0_82 = arith.constant 0 : index
    %c0_83 = arith.constant 0 : index
    %187 = vector.load %arg15[%c0_81, %c0_82, %c0_83] : memref<1x8x32xf32, #tpu.memory_space<vmem>>, vector<1x8x32xf32>
    %188 = vector.shape_cast %187 : vector<1x8x32xf32> to vector<8x32xf32>
    %189 = vector.shape_cast %186 : vector<8x32xf32> to vector<1x8x32xf32>
    tpu.vector_store %arg15[%c0_81, %c0_82, %c0_83], %189 {strides = array<i32>} : memref<1x8x32xf32, #tpu.memory_space<vmem>>, vector<1x8x32xf32>,
    return
  }
  func.func @transform_0(%arg0: i32, %arg1: i32) -> (i32, i32, i32) {
    %c0_i32 = arith.constant 0 : i32
    %c0_i32_0 = arith.constant 0 : i32
    %c0_i32_1 = arith.constant 0 : i32
    return %arg0, %c0_i32, %c0_i32_0 : i32, i32, i32
  }
  func.func @transform_1(%arg0: i32, %arg1: i32) -> (i32, i32) {
    %c0_i32 = arith.constant 0 : i32
    %c0_i32_0 = arith.constant 0 : i32
    %c0_i32_1 = arith.constant 0 : i32
    return %c0_i32, %c0_i32_0 : i32, i32
  }
  func.func @transform_2(%arg0: i32, %arg1: i32) -> (i32, i32) {
    %c0_i32 = arith.constant 0 : i32
    %c0_i32_0 = arith.constant 0 : i32
    %c0_i32_1 = arith.constant 0 : i32
    return %c0_i32, %c0_i32_0 : i32, i32
  }
  func.func @transform_3(%arg0: i32, %arg1: i32) -> (i32, i32) {
    %c0_i32 = arith.constant 0 : i32
    %c0_i32_0 = arith.constant 0 : i32
    %c0_i32_1 = arith.constant 0 : i32
    return %c0_i32, %c0_i32_0 : i32, i32
  }
  func.func @transform_4(%arg0: i32, %arg1: i32) -> (i32, i32) {
    %c0_i32 = arith.constant 0 : i32
    %c0_i32_0 = arith.constant 0 : i32
    %c0_i32_1 = arith.constant 0 : i32
    return %c0_i32, %c0_i32_0 : i32, i32
  }
  func.func @transform_5(%arg0: i32, %arg1: i32) -> (i32, i32) {
    %c0_i32 = arith.constant 0 : i32
    %c0_i32_0 = arith.constant 0 : i32
    %c0_i32_1 = arith.constant 0 : i32
    return %c0_i32, %c0_i32_0 : i32, i32
  }
  func.func @transform_6(%arg0: i32, %arg1: i32) -> (i32, i32) {
    %c0_i32 = arith.constant 0 : i32
    %c0_i32_0 = arith.constant 0 : i32
    %c0_i32_1 = arith.constant 0 : i32
    return %c0_i32, %c0_i32_0 : i32, i32
  }
  func.func @transform_7(%arg0: i32, %arg1: i32) -> (i32, i32) {
    %c0_i32 = arith.constant 0 : i32
    %c0_i32_0 = arith.constant 0 : i32
    %c0_i32_1 = arith.constant 0 : i32
    return %c0_i32, %c0_i32_0 : i32, i32
  }
  func.func @transform_8(%arg0: i32, %arg1: i32) -> (i32, i32) {
    %c0_i32 = arith.constant 0 : i32
    %c0_i32_0 = arith.constant 0 : i32
    %c0_i32_1 = arith.constant 0 : i32
    return %c0_i32, %c0_i32_0 : i32, i32
  }
  func.func @transform_9(%arg0: i32, %arg1: i32) -> (i32, i32) {
    %c0_i32 = arith.constant 0 : i32
    %c0_i32_0 = arith.constant 0 : i32
    %c0_i32_1 = arith.constant 0 : i32
    return %c0_i32, %c0_i32_0 : i32, i32
  }
  func.func @transform_10(%arg0: i32, %arg1: i32) -> (i32, i32) {
    %c0_i32 = arith.constant 0 : i32
    %c0_i32_0 = arith.constant 0 : i32
    %c0_i32_1 = arith.constant 0 : i32
    return %c0_i32, %c0_i32_0 : i32, i32
  }
  func.func @transform_11(%arg0: i32, %arg1: i32) -> (i32, i32) {
    %c0_i32 = arith.constant 0 : i32
    %c0_i32_0 = arith.constant 0 : i32
    %c0_i32_1 = arith.constant 0 : i32
    return %c0_i32, %c0_i32_0 : i32, i32
  }
  func.func @transform_12(%arg0: i32, %arg1: i32) -> (i32, i32) {
    %c0_i32 = arith.constant 0 : i32
    %c0_i32_0 = arith.constant 0 : i32
    %c0_i32_1 = arith.constant 0 : i32
    return %c0_i32, %c0_i32_0 : i32, i32
  }
  func.func @transform_13(%arg0: i32, %arg1: i32) -> (i32, i32, i32) {
    %c0_i32 = arith.constant 0 : i32
    %c0_i32_0 = arith.constant 0 : i32
    return %arg0, %arg1, %c0_i32 : i32, i32, i32
  }
}

</mosaic_0001>

<bundles_post_ra>
// kernel: tpu_custom_call.1
= control target key start
LH: loop header
LB: loop body
LE: loop exit
PB: predicated region body
PF: predicated region fallthrough
CT: control target
= control target key end

     0   :  { %s2448_s0 = inlined_call_operand.vmem [shape: f32[2,8,32], index: 0, kind: input, shape index: {}]   ;;  %s2449_s1 = inlined_call_operand.vmem [shape: bf16[32,96], index: 1, kind: input, shape index: {}]   ;;  %s2450_s2 = inlined_call_operand.vmem [shape: f32[1,96], index: 2, kind: input, shape index: {}]   ;;  %s2451_s3 = inlined_call_operand.vmem [shape: bf16[32,32], index: 3, kind: input, shape index: {}]   ;;  %s2452_s4 = inlined_call_operand.vmem [shape: f32[1,32], index: 4, kind: input, shape index: {}]   ;;  %s2453_s5 = inlined_call_operand.vmem [shape: f32[1,32], index: 5, kind: input, shape index: {}]   ;;  %s2454_s6 = inlined_call_operand.vmem [shape: f32[1,32], index: 6, kind: input, shape index: {}]   ;;  %s2455_s7 = inlined_call_operand.vmem [shape: f32[1,32], index: 7, kind: input, shape index: {}]   ;;  %s2456_s8 = inlined_call_operand.vmem [shape: f32[1,32], index: 8, kind: input, shape index: {}]   ;;  %s2457_s9 = inlined_call_operand.vmem [shape: bf16[32,128], index: 9, kind: input, shape index: {}]   ;;  %s2458_s10 = inlined_call_operand.vmem [shape: f32[1,128], index: 10, kind: input, shape index: {}]   ;;  %s2459_s11 = inlined_call_operand.vmem [shape: bf16[128,32], index: 11, kind: input, shape index: {}]   ;;  %s2460_s12 = inlined_call_operand.vmem [shape: f32[1,32], index: 12, kind: input, shape index: {}]   ;;  %s2461_s13 = inlined_call_operand.hbm [shape: f32[2,8,32], index: 13, kind: output, shape index: {}]  }
   0x1   :  { %2463 = sst [smem:[#allocation8_spill]] %s2448_s0 }
   0x2   :  { %2464 = sst [smem:[#allocation9_spill]] %s2449_s1 }
   0x3   :  { %2465 = sst [smem:[#allocation10_spill]] %s2450_s2 }
   0x4   :  { %18 = vsyncpa [#allocation5], 0 }
   0x5   :  { %20 = vsyncpa [#allocation5 + $0x1], 0  ;;  %s2124_s25 = smov 0   ;;  %s2126_s26 = smov 0  }
   0x6   :  { %s2128_s27 = smov 0   ;;  %s2130_s28 = smov 0  }
   0x7   :  { %s2132_s29 = smov 0   ;;  %s2134_s30 = smov 0  }
   0x8 LB: > { %s1642_s14 = sadd.s32 4294967295, %s2045_s30   ;;  %s1643_s15 = sadd.s32 4294967294, %s2045_s30   ;;  %s2045_s30 = sphi %s2134_s30, %s26_s30   ;;  %s2041_s29 = sphi %s2132_s29, %s2477_s29   ;;  %s2037_s28 = sphi %s2130_s28, %s2476_s28   ;;  %s2033_s27 = sphi %s2128_s27, %s2475_s27   ;;  %s2029_s26 = sphi %s2126_s26, %s2474_s26   ;;  %s2025_s25 = sphi %s2124_s25, %s2473_s25  }
   0x9   : > { %s38_s16 = sadd.s32 1, %s2041_s29  ;;  %s325_s17 = sadd.s32 1, %s2033_s27 }
   0xa   : > { %p40_p0 = scmp.ge.s32.totalorder %s38_s16, 2  ;;  %p335_p1 = scmp.ne.s32.totalorder %s2033_s27, %s2029_s26 }
   0xb   : > { %p336_p2 = scmp.eq.s32.totalorder %s1642_s14, 1  ;;  %p341_p3 = scmp.ne.s32.totalorder %s2029_s26, %s2025_s25 }
   0xc   : > { %s2479_s16 = smov (%p40_p0, %s38_s16), 0  ;;  %p342_p5 = scmp.eq.s32.totalorder %s1643_s15, 1 }
   0xd   : > { %2466 = sst [smem:[#allocation7_spill]] %s2479_s16  ;;  %p2164_p4 = por %p336_p2, %p335_p1 }
   0xe   : > { %s320_s19 = ssub.s32 %s2041_s29, %s2479_s16  ;;  %p1646_p6 = scmp.ge.s32.totalorder %s2045_s30, 1 }
   0xf   : > { %p323_p7 = scmp.eq.s32.totalorder %s320_s19, 0  ;;  %p2171_p8 = por %p342_p5, %p341_p3 }
  0x10   : > { %p403_p9 = scmp.lt.s32.totalorder %s2045_s30, 3 }
  0x11   : > { %s2177_s21 = scalar_select %p323_p7, %s2033_s27, %s325_s17  }
  0x12   : > { %p404_p10 = pnand %p1646_p6, %p403_p9 }
  0x13   : > { %p446_p11 = scmp.lt.s32.totalorder (!%p404_p10), %s2037_s28, 1  ;;  %vm458_vm0 = vcmask (!%p404_p10), 261120   ;;  %s2469_s0 = sld [smem:[#allocation8_spill]] (!%p404_p10)  ;;  %v2048_v14 = vmov (!%p404_p10), 0.0   ;;  %vm2049_vm1 = vmmov (!%p404_p10), 0   ;;  %vm561_vm2 = vcmask (!%p404_p10), 257024  }
  0x14   : > { %407 = sbr.rel (%p404_p10) target bundleno = 3732 (0xe94), region = 72  ;;  %s2470_s1 = sld [smem:[#allocation9_spill]] (!%p404_p10)  ;;  %1744 = vmatprep.subr.bf16.mxu0 (!%p404_p10), %v2048_v14  ;;  %1766 = vmatprep.subr.bf16.mxu1 (!%p404_p10), %v2048_v14  ;;  %v1649_v25 = vld [vmem:[%s2453_s5] ss:$0 sm:$0xff] (!%p404_p10)  ;;  %vm674_vm3 = vcmask (!%p404_p10), 64512   ;;  %vm736_vm4 = vcmask (!%p404_p10), 1043456  }
  0x15   : > { %s2047_s16 = smov (!%p404_p10), 96   ;;  %1748 = vmatprep.mubr.msk.bf16.mxu0 (!%p404_p10), %vm2049_vm1, %v2048_v14  ;;  %1768 = vmatprep.mubr.msk.bf16.mxu1 (!%p404_p10), %vm2049_vm1, %v2048_v14  ;;  %s2471_s2 = sld [smem:[#allocation10_spill]] (!%p404_p10)  ;;  %v1650_v27 = vld [vmem:[%s2454_s6] ss:$0 sm:$0xff] (!%p404_p10) }
  0x16   : > { %s2050_s17 = smov (!%p404_p10), 120   ;;  %s2051_s19 = smov (!%p404_p10), 112  }
  0x17   : > { %s2052_s14 = smov (!%p404_p10), 104  }
  0x1a   : > { %v1921_v2 = vld [vmem:[%s2470_s1] sm:$0xff] (!%p404_p10)   ;;  %v1922_v13 = vld [vmem:[%s2470_s1 + $0x8] sm:$0xff] (!%p404_p10)  }
  0x1b   : > { %s447_s22 = scalar_select %p446_p11, %s2037_s28, 1  ;;  %v1651_v16 = vld [vmem:[%s2471_s2] ss:$0 sm:$0xff]  ;;  %v1924_v35 = vld [vmem:[%s2470_s1 + $0x8] sm:$0xff]  }
  0x1c   : > { %v1923_v32 = vld [vmem:[%s2470_s1] sm:$0xff]  }
  0x1d   : > { %s1648_s23 = sshll.u32 %s447_s22, 3  ;;  %s1698_s22 = sshll.u32 %s2037_s28, 7 }
  0x1e   : > { %s449_s15 = scalar_lea.vmem %s2469_s0, %s1648_s23  ;;  %s2400_s1 = scalar_lea.hbm %s2461_s13, %s1698_s22 }
  0x1f   : > { %v2184_v0 = vld [vmem:[%s449_s15] sm:$0xff]  ;;  %s443_s15 = sand.u32 1, %s2029_s26  }
  0x20   : > { %v459_v1 = vsel %vm458_vm0, %v2184_v0, 0.0  ;;  %s1558_s28 = scalar_lea.sflag [#allocation5], %s443_s15 }
  0x21   : > { %460 = vadd.xlane.f32.xlu0 %v459_v1 }
  0x25   : > { %577 = vadd.xlane.f32.xlu0 %v459_v1 }
  0x3b   : > { %508 = vrot.lane.b32.xlu0 %v1921_v2, %s2047_s16 }
  0xae   : > { %v461_v3 = vpop.xlane.xlu0 %460 }
  0xaf   : > { %v463_v4 = vmul.f32 0.03125, %v461_v3 }
  0xb1   : > { %v464_v5 = vsub.f32 %v2184_v0, %v463_v4 }
  0xb2   : > { %v578_v6 = vpop.xlane.xlu0 %577 }
  0xb3   : > { %v580_v7 = vmul.f32 0.03125, %v578_v6  ;;  %v465_v8 = vmul.f32 %v464_v5, %v464_v5 }
  0xb5   : > { %v581_v9 = vsub.f32 %v2184_v0, %v580_v7  ;;  %v466_v10 = vsel %vm458_vm0, %v465_v8, 0.0 }
  0xb6   : > { %467 = vadd.xlane.f32.xlu1 %v466_v10  ;;  %v509_v15 = vpop.permute.xlu0 %508 }
  0xb7   : > { %v582_v11 = vmul.f32 %v581_v9, %v581_v9  ;;  %1745 = vmatpush3.bf16.msra.mxu0 %v509_v15 }
  0xb8   : > { %1746 = vmatprep.subr.bf16.mxu0 %v2048_v14 }
  0xb9   : > { %v583_v12 = vsel %vm458_vm0, %v582_v11, 0.0 }
  0xba   : > { %584 = vadd.xlane.f32.xlu1 %v583_v12 }
  0xcb   : > { %510 = vrot.lane.b32.xlu1 %v1922_v13, %s2047_s16 }
  0xcf   : > { %514 = vrot.lane.b32.xlu1 %v1651_v16, %s2047_s16 }
 0x143   : > { %v468_v17 = vpop.xlane.xlu1 %467 }
 0x144   : > { %v469_v18 = vmul.f32 0.03125, %v468_v17 }
 0x146   : > { %v470_v19 = vadd.f32 1e-05, %v469_v18 }
 0x147   : > { %v585_v20 = vpop.xlane.xlu1 %584 }
 0x148   : > { %1941 = vrsqrt.f32 %v470_v19  ;;  %v586_v21 = vmul.f32 0.03125, %v585_v20 }
 0x14a   : > { %v587_v22 = vadd.f32 1e-05, %v586_v21 }
 0x14b   : > { %v511_v23 = vpop.permute.xlu1 %510 }
 0x14c   : > { %1943 = vrsqrt.f32 %v587_v22  ;;  %1747 = vmatpush3.bf16.msra.mxu0 %v511_v23 }
 0x14d   : > { %1752 = vmatprep.subr.bf16.mxu0 %v2048_v14 }
 0x14f   : > { %v515_v38 = vpop.permute.xlu1 %514 }
 0x152   : > { %v1942_v24 = vpop.eup %1941 }
 0x153   : > { %v472_v26 = vmul.f32 %v1942_v24, %v464_v5  ;;  %v902_v24 = vld [vmem:[%s2451_s3 + $0x4] sm:$0xf] }
 0x155   : > { %v479_v28 = vmul.f32 %v1649_v25, %v472_v26 }
 0x156   : > { %v1944_v29 = vpop.eup %1943 }
 0x157   : > { %v589_v30 = vmul.f32 %v1944_v29, %v581_v9  ;;  %v486_v31 = vadd.f32 %v1650_v27, %v479_v28 }
 0x159   : > { %v487_v33 = vpack.c.bf16 %v486_v31, %v486_v31  ;;  %v596_v34 = vmul.f32 %v1649_v25, %v589_v30  ;;  %v907_v25 = vsel %vm736_vm4, %v902_v24, 0  ;;  %v781_v30 = vld [vmem:[%s2451_s3] sm:$0xf] }
 0x15b   : > { %1749 = vmatmul.mubr.msk.bf16.vlgmr.msra.gmra.mrb[0].mxu0 %vm458_vm0, %v487_v33  ;;  %v603_v36 = vadd.f32 %v1650_v27, %v596_v34  ;;  %v953_v33 = vsel %vm736_vm4, %v781_v30, 0 }
 0x15c   : > { %1753 = vmatpush3.bf16.msra.mxu0 %v1923_v32  ;;  %1756 = vmatprep.mubr.msk.bf16.mxu0 %vm2049_vm1, %v2048_v14 }
 0x15d   : > { %1754 = vmatprep.subr.bf16.mxu0 %v2048_v14  ;;  %v604_v37 = vpack.c.bf16 %v603_v36, %v603_v36 }
 0x160   : > { %1755 = vmatpush3.bf16.msra.mxu0 %v1924_v35 }
 0x161   : > { %1760 = vmatprep.subr.bf16.mxu0 %v2048_v14 }
 0x163   : > { %1757 = vmatmul.mubr.msk.bf16.vlgmr.msra.gmra.mrb[4].mxu0 %vm458_vm0, %v604_v37 }
 0x164   : > { %1762 = vmatprep.mubr.msk.bf16.mxu0 %vm2049_vm1, %v2048_v14 }
 0x22e   : > { %v554_v39 = vpop.f32.mrb[0].mxu0 }
 0x22f   : > { %v555_v40 = vadd.f32 %v554_v39, %v515_v38  ;;  %v1750_v41 = vpop.f32.mrb[1].mxu0 }
 0x230   : > { %v557_v42 = vpop.f32.mrb[2].mxu0 }
 0x231   : > { %v560_v43 = vpack.c.bf16 %v555_v40, %v555_v40  ;;  %v1751_v44 = vpop.f32.mrb[3].mxu0 }
 0x233   : > { %562 = vst.msk [vmem:[#allocation2] sm:$0xf] %vm561_vm2, %v560_v43 }
 0x236   : > { %v665_v45 = vpop.f32.mrb[4].mxu0 }
 0x237   : > { %v666_v46 = vadd.f32 %v1651_v16, %v665_v45  ;;  %v1758_v47 = vpop.f32.mrb[5].mxu0 }
 0x238   : > { %v668_v48 = vpop.f32.mrb[6].mxu0 }
 0x239   : > { %v2233_v49 = vpack.c.bf16 %v666_v46, %v666_v46  ;;  %v1759_v50 = vpop.f32.mrb[7].mxu0 }
 0x23a   : > { %v672_v51 = vld [vmem:[#allocation2] sm:$0xf] }
 0x23b   : > { %v1925_v52 = vld [vmem:[#allocation2] ss:$0 sps:$4 sm:$0xff]   ;;  %785 = vrot.lane.b32.xlu0 %v2233_v49, %s2050_s17  ;;  %v679_v53 = vsel %vm674_vm3, %v672_v51, 0 }
 0x23c   : > { %1761 = vmatpush3.bf16.xpose.msra.mxu0 %v679_v53  ;;  %790 = vrot.lane.b32.xlu1 %v1925_v52, %s2050_s17  ;;  %v1926_v4 = vld [vmem:[#allocation2] ss:$0 sps:$4 sm:$0xff]  }
 0x23d   : > { %1772 = vmatprep.subr.bf16.mxu0 %v2048_v14 }
 0x243   : > { %1763 = vmatmul.mubr.msk.bf16.vlgmr.msra.gmra.mrb[8].mxu0 %vm674_vm3, %v2233_v49 }
 0x244   : > { %1774 = vmatprep.mubr.msk.bf16.mxu0 %vm2049_vm1, %v2048_v14 }
 0x2ad   : > { %v786_v56 = vpop.permute.xlu0 %785 }
 0x2ae   : > { %v791_v54 = vpop.permute.xlu1 %790 }
 0x2af   : > { %v796_v55 = vsel %vm674_vm3, %v791_v54, 0 }
 0x2b0   : > { %1773 = vmatpush3.bf16.xpose.msra.mxu0 %v796_v55 }
 0x2b1   : > { %1784 = vmatprep.subr.bf16.mxu0 %v2048_v14 }
 0x2b7   : > { %1775 = vmatmul.mubr.msk.bf16.vlgmr.msra.gmra.mrb[12].mxu0 %vm674_vm3, %v786_v56 }
 0x2b8   : > { %1786 = vmatprep.mubr.msk.bf16.mxu0 %vm2049_vm1, %v2048_v14  ;;  %1785 = vmatpush3.bf16.msra.mxu0 %v907_v25 }
 0x2b9   : > { %1796 = vmatprep.subr.bf16.mxu0 %v2048_v14 }
 0x316   : > { %v715_v57 = vpop.f32.mrb[8].mxu0 }
 0x317   : > { %v1764_v58 = vpop.f32.mrb[9].mxu0  ;;  %v721_v59 = vsel %vm674_vm3, %v715_v57, -inf }
 0x318   : > { %722 = vmax.xlane.f32.xlu1 %v721_v59  ;;  %v718_v60 = vpop.f32.mrb[10].mxu0 }
 0x319   : > { %v1765_v61 = vpop.f32.mrb[11].mxu0 }
 0x38a   : > { %v832_v62 = vpop.f32.mrb[12].mxu0 }
 0x38b   : > { %v1776_v63 = vpop.f32.mrb[13].mxu0  ;;  %v838_v1 = vsel %vm674_vm3, %v832_v62, -inf }
 0x38c   : > { %839 = vmax.xlane.f32.xlu0 %v838_v1  ;;  %v835_v2 = vpop.f32.mrb[14].mxu0 }
 0x38d   : > { %v1777_v3 = vpop.f32.mrb[15].mxu0 }
 0x3a2   : > { %566 = vrot.lane.b32.xlu0 %v560_v43, %s2047_s16 }
 0x3a5   : > { %v723_v5 = vpop.xlane.xlu1 %722 }
 0x3a6   : > { %v724_v6 = vsub.f32 %v715_v57, %v723_v5  ;;  %1002 = vrot.lane.b32.xlu0 %v1926_v4, %s2051_s19 }
 0x3a8   : > { %v725_v7 = vmul.f32 1.442695, %v724_v6 }
 0x3aa   : > { %1945 = vpow2.f32 %v725_v7  ;;  %997 = vrot.lane.b32.xlu0 %v2233_v49, %s2051_s19 }
 0x3b4   : > { %v1946_v8 = vpop.eup %1945 }
 0x3b5   : > { %v727_v9 = vsel %vm674_vm3, %v1946_v8, 0.0 }
 0x3b6   : > { %728 = vadd.xlane.f32.xlu1 %v727_v9 }
 0x419   : > { %v840_v10 = vpop.xlane.xlu0 %839 }
 0x41a   : > { %v841_v11 = vsub.f32 %v832_v62, %v840_v10  ;;  %v1928_v62 = vld [vmem:[#allocation2] ss:$0 sps:$4 sm:$0xff]  }
 0x41c   : > { %v842_v12 = vmul.f32 1.442695, %v841_v11 }
 0x41d   : > { %v567_v13 = vpop.permute.xlu0 %566 }
 0x41e   : > { %1947 = vpow2.f32 %v842_v12  ;;  %569 = vst.msk [vmem:[#allocation3] sm:$0xf] %vm561_vm2, %v567_v13 }
 0x421   : > { %v1003_v39 = vpop.permute.xlu0 %1002 }
 0x422   : > { %v1008_v44 = vsel %vm674_vm3, %v1003_v39, 0 }
 0x425   : > { %v673_v15 = vld [vmem:[#allocation3] sm:$0xf]  ;;  %v998_v46 = vpop.permute.xlu0 %997 }
 0x426   : > { %v738_v16 = vsel %vm736_vm4, %v673_v15, 0  ;;  %v1927_v19 = vld [vmem:[#allocation3] ss:$0 sps:$4 sm:$0xff]   ;;  %v1114_v15 = vld [vmem:[%s2451_s3 + $0x8] sm:$0xf] }
 0x427   : > { %1767 = vmatpush3.bf16.msra.mxu1 %v738_v16  ;;  %v1929_v5 = vld [vmem:[#allocation3] ss:$0 sps:$4 sm:$0xff]   ;;  %v1119_v16 = vsel %vm736_vm4, %v1114_v15, 0  ;;  %v1934_v15 = vld [vmem:[%s2459_s11 + $0x8] sm:$0xff]  }
 0x428   : > { %v1948_v17 = vpop.eup %1947  ;;  %1778 = vmatprep.subr.bf16.mxu1 %v2048_v14 }
 0x429   : > { %v844_v18 = vsel %vm674_vm3, %v1948_v17, 0.0 }
 0x42a   : > { %845 = vadd.xlane.f32.xlu1 %v844_v18 }
 0x43b   : > { %853 = vrot.lane.b32.xlu1 %v1927_v19, %s2050_s17  ;;  %s1647_s17 = sshll.u32 %s443_s15, 3 }
 0x43c   : > { %s445_s23 = scalar_lea.vmem [#allocation4], %s1647_s17 }
 0x43d   : > { %s1572_s24 = sshll.u32 %s445_s23, 4  ;;  %s2402_s24 = int_to_ptr.vmem [resolvable:$true] %s1572_s24 }
 0x43e   : > { %s1967_s17 = scalar_lea.vmem %s2402_s24, 128 }
 0x43f   : > { %p1968_p12 = scmp.ne.s32.totalorder %s2402_s24, %s1967_s17 }
 0x441   : > { %p1969_p13 = pnand %p1968_p12, %p2164_p4 }
 0x443   : > { %v729_v20 = vpop.xlane.xlu1 %728  ;;  %p1970_p0 = pneg %p1969_p13 }
 0x444   : > { %1949 = vrcp.f32 %v729_v20 }
 0x44e   : > { %v1950_v21 = vpop.eup %1949 }
 0x44f   : > { %v731_v22 = vmul.f32 %v1950_v21, %v1946_v8 }
 0x451   : > { %v732_v23 = vpack.c.bf16 %v731_v22, %v731_v22 }
 0x453   : > { %1769 = vmatmul.mubr.msk.bf16.vlgmr.msra.gmra.mrb[0].mxu1 %vm674_vm3, %v732_v23 }
 0x454   : > { %1780 = vmatprep.mubr.msk.bf16.mxu1 %vm2049_vm1, %v2048_v14 }
 0x4b7   : > { %v846_v26 = vpop.xlane.xlu1 %845 }
 0x4b8   : > { %1951 = vrcp.f32 %v846_v26 }
 0x4bb   : > { %v854_v27 = vpop.permute.xlu1 %853 }
 0x4bc   : > { %v859_v28 = vsel %vm736_vm4, %v854_v27, 0  ;;  %v1930_v27 = vld [vmem:[#allocation3] ss:$0 sps:$4 sm:$0xff]  }
 0x4bd   : > { %1779 = vmatpush3.bf16.msra.mxu1 %v859_v28 }
 0x4be   : > { %1790 = vmatprep.subr.bf16.mxu1 %v2048_v14 }
 0x4c2   : > { %v1952_v29 = vpop.eup %1951 }
 0x4c3   : > { %v848_v31 = vmul.f32 %v1952_v29, %v1948_v17 }
 0x4c5   : > { %v849_v32 = vpack.c.bf16 %v848_v31, %v848_v31 }
 0x4c7   : > { %1781 = vmatmul.mubr.msk.bf16.vlgmr.msra.gmra.mrb[4].mxu1 %vm674_vm3, %v849_v32 }
 0x4c8   : > { %1791 = vmatpush3.bf16.msra.mxu1 %v953_v33  ;;  %1792 = vmatprep.mubr.msk.bf16.mxu1 %vm2049_vm1, %v2048_v14 }
 0x4c9   : > { %1802 = vmatprep.subr.bf16.mxu1 %v2048_v14 }
 0x526   : > { %v774_v34 = vpop.f32.mrb[0].mxu1 }
 0x527   : > { %v780_v35 = vpack.c.bf16 %v774_v34, %v774_v34  ;;  %v1770_v36 = vpop.f32.mrb[1].mxu1 }
 0x528   : > { %v777_v37 = vpop.f32.mrb[2].mxu1 }
 0x529   : > { %v1771_v38 = vpop.f32.mrb[3].mxu1  ;;  %1793 = vmatmul.mubr.msk.bf16.vlgmr.msra.gmra.mrb[8].mxu1 %vm674_vm3, %v780_v35  ;;  %v1281_v35 = vld [vmem:[%s2451_s3 + $0xc] sm:$0xf] }
 0x52a   : > { %1804 = vmatprep.mubr.msk.bf16.mxu1 %vm2049_vm1, %v2048_v14  ;;  %v1286_v36 = vsel %vm736_vm4, %v1281_v35, 0  ;;  %v1696_v35 = vld [vmem:[%s2460_s12] ss:$0 sm:$0xff] }
 0x59a   : > { %v895_v40 = vpop.f32.mrb[4].mxu1 }
 0x59b   : > { %v901_v41 = vpack.c.bf16 %v895_v40, %v895_v40  ;;  %v1782_v42 = vpop.f32.mrb[5].mxu1 }
 0x59c   : > { %v898_v43 = vpop.f32.mrb[6].mxu1 }
 0x59d   : > { %v1783_v45 = vpop.f32.mrb[7].mxu1  ;;  %1787 = vmatmul.mubr.msk.bf16.vlgmr.msra.gmra.mrb[16].mxu0 %vm674_vm3, %v901_v41 }
 0x59e   : > { %1797 = vmatpush3.bf16.xpose.msra.mxu0 %v1008_v44  ;;  %1798 = vmatprep.mubr.msk.bf16.mxu0 %vm2049_vm1, %v2048_v14 }
 0x59f   : > { %1808 = vmatprep.subr.bf16.mxu0 %v2048_v14 }
 0x5a5   : > { %1799 = vmatmul.mubr.msk.bf16.vlgmr.msra.gmra.mrb[20].mxu0 %vm674_vm3, %v998_v46 }
 0x5a6   : > { %1810 = vmatprep.mubr.msk.bf16.mxu0 %vm2049_vm1, %v2048_v14  ;;  %1809 = vmatpush3.bf16.msra.mxu0 %v1119_v16  ;;  %v1935_v16 = vld [vmem:[%s2459_s11 + $0x10] sm:$0xff]  }
 0x5a7   : > { %1820 = vmatprep.subr.bf16.mxu0 %v2048_v14 }
 0x5fc   : > { %v989_v47 = vpop.f32.mrb[8].mxu1 }
 0x5fd   : > { %v1794_v48 = vpop.f32.mrb[9].mxu1 }
 0x5fe   : > { %v992_v50 = vpop.f32.mrb[10].mxu1 }
 0x5ff   : > { %v1795_v51 = vpop.f32.mrb[11].mxu1 }
 0x670   : > { %v943_v52 = vpop.f32.mrb[16].mxu0 }
 0x671   : > { %v2290_v53 = vadd.f32 %v989_v47, %v943_v52  ;;  %v1788_v54 = vpop.f32.mrb[17].mxu0 }
 0x672   : > { %v946_v55 = vpop.f32.mrb[18].mxu0 }
 0x673   : > { %v1789_v56 = vpop.f32.mrb[19].mxu0  ;;  %v1680_v55 = vld [vmem:[%s2452_s4] ss:$0 sm:$0xff] }
 0x678   : > { %v1044_v57 = vpop.f32.mrb[20].mxu0 }
 0x679   : > { %v1800_v58 = vpop.f32.mrb[21].mxu0  ;;  %v1050_v59 = vsel %vm674_vm3, %v1044_v57, -inf }
 0x67a   : > { %1051 = vmax.xlane.f32.xlu1 %v1050_v59  ;;  %v1047_v60 = vpop.f32.mrb[22].mxu0 }
 0x67b   : > { %v1801_v61 = vpop.f32.mrb[23].mxu0 }
 0x68b   : > { %1169 = vrot.lane.b32.xlu1 %v1928_v62, %s2052_s14 }
 0x68f   : > { %1164 = vrot.lane.b32.xlu1 %v2233_v49, %s2052_s14 }
 0x707   : > { %v1052_v63 = vpop.xlane.xlu1 %1051 }
 0x708   : > { %v1053_v1 = vsub.f32 %v1044_v57, %v1052_v63 }
 0x70a   : > { %v1054_v2 = vmul.f32 1.442695, %v1053_v1 }
 0x70b   : > { %v1170_v10 = vpop.permute.xlu1 %1169 }
 0x70c   : > { %1953 = vpow2.f32 %v1054_v2  ;;  %v1175_v12 = vsel %vm674_vm3, %v1170_v10, 0 }
 0x70f   : > { %v1165_v13 = vpop.permute.xlu1 %1164 }
 0x716   : > { %v1954_v3 = vpop.eup %1953 }
 0x717   : > { %v1056_v4 = vsel %vm674_vm3, %v1954_v3, 0.0 }
 0x718   : > { %1057 = vadd.xlane.f32.xlu0 %v1056_v4 }
 0x72e   : > { %1065 = vrot.lane.b32.xlu0 %v1929_v5, %s2051_s19  ;;  %s2053_s19 = smov [#allocation4]  }
 0x72f   : > { %s1971_s16 = sshll.u32 %s2053_s19, 4  ;;  %s1972_s16 = int_to_ptr.vmem [resolvable:$false] %s1971_s16 }
 0x730   : > { %s1973_s2 = scalar_lea.vmem %s1972_s16, 256  ;;  %p1974_p1 = scmp.lt.s32.totalorder %s2402_s24, %s1972_s16 }
 0x731   : > { %p1975_p2 = scmp.lt.s32.totalorder %s1973_s2, %s1967_s17 }
 0x733   : > { %p1976_p3 = por %p1975_p2, %p1974_p1 }
 0x735   : > { %p1977_p5 = pnand %p1976_p3, %p1970_p0 }
 0x7a5   : > { %v1058_v6 = vpop.xlane.xlu0 %1057 }
 0x7a6   : > { %1955 = vrcp.f32 %v1058_v6 }
 0x7a9   : > { %v1066_v7 = vpop.permute.xlu0 %1065 }
 0x7aa   : > { %v1071_v8 = vsel %vm736_vm4, %v1066_v7, 0 }
 0x7ab   : > { %1803 = vmatpush3.bf16.msra.mxu1 %v1071_v8  ;;  %v1681_v8 = vld [vmem:[%s2455_s7] ss:$0 sm:$0xff] }
 0x7ac   : > { %1814 = vmatprep.subr.bf16.mxu1 %v2048_v14 }
 0x7b0   : > { %v1956_v49 = vpop.eup %1955 }
 0x7b1   : > { %v1060_v9 = vmul.f32 %v1956_v49, %v1954_v3  ;;  %v1931_v3 = vld [vmem:[%s2457_s9] sm:$0xff]  }
 0x7b3   : > { %v1061_v11 = vpack.c.bf16 %v1060_v9, %v1060_v9  ;;  %v1682_v9 = vld [vmem:[%s2456_s8] ss:$0 sm:$0xff] }
 0x7b5   : > { %1805 = vmatmul.mubr.msk.bf16.vlgmr.msra.gmra.mrb[12].mxu1 %vm674_vm3, %v1061_v11 }
 0x7b6   : > { %1815 = vmatpush3.bf16.xpose.msra.mxu1 %v1175_v12  ;;  %1816 = vmatprep.mubr.msk.bf16.mxu1 %vm2049_vm1, %v2048_v14 }
 0x7b7   : > { %1826 = vmatprep.subr.bf16.mxu1 %v2048_v14 }
 0x7bd   : > { %1817 = vmatmul.mubr.msk.bf16.vlgmr.msra.gmra.mrb[16].mxu1 %vm674_vm3, %v1165_v13  ;;  %v1933_v13 = vld [vmem:[%s2459_s11] sm:$0xff]  }
 0x7be   : > { %1828 = vmatprep.mubr.msk.bf16.mxu1 %vm2049_vm1, %v2048_v14  ;;  %1827 = vmatpush3.bf16.msra.mxu1 %v1286_v36 }
 0x7bf   : > { %1840 = vmatprep.subr.bf16.mxu1 %v2048_v14 }
 0x888   : > { %v1107_v17 = vpop.f32.mrb[12].mxu1 }
 0x889   : > { %v1113_v18 = vpack.c.bf16 %v1107_v17, %v1107_v17  ;;  %v1806_v19 = vpop.f32.mrb[13].mxu1  ;;  %v1936_v17 = vld [vmem:[%s2459_s11 + $0x18] sm:$0xff]  }
 0x88a   : > { %v1110_v20 = vpop.f32.mrb[14].mxu1  ;;  %v1938_v19 = vld [vmem:[%s2459_s11 + $0x28] sm:$0xff]  }
 0x88b   : > { %v1807_v21 = vpop.f32.mrb[15].mxu1  ;;  %1811 = vmatmul.mubr.msk.bf16.vlgmr.msra.gmra.mrb[24].mxu0 %vm674_vm3, %v1113_v18  ;;  %v1937_v18 = vld [vmem:[%s2459_s11 + $0x20] sm:$0xff]   ;;  %v1939_v20 = vld [vmem:[%s2459_s11 + $0x30] sm:$0xff]  }
 0x88c   : > { %1822 = vmatprep.mubr.msk.bf16.mxu0 %vm2049_vm1, %v2048_v14  ;;  %v1940_v21 = vld [vmem:[%s2459_s11 + $0x38] sm:$0xff]  }
 0x890   : > { %v1211_v22 = vpop.f32.mrb[16].mxu1 }
 0x891   : > { %v1818_v23 = vpop.f32.mrb[17].mxu1  ;;  %v1217_v24 = vsel %vm674_vm3, %v1211_v22, -inf }
 0x892   : > { %1218 = vmax.xlane.f32.xlu0 %v1217_v24  ;;  %v1214_v25 = vpop.f32.mrb[18].mxu1 }
 0x893   : > { %v1819_v26 = vpop.f32.mrb[19].mxu1 }
 0x8a8   : > { %1232 = vrot.lane.b32.xlu0 %v1930_v27, %s2052_s14 }
 0x91f   : > { %v1219_v28 = vpop.xlane.xlu0 %1218 }
 0x920   : > { %v1220_v29 = vsub.f32 %v1211_v22, %v1219_v28  ;;  %v1683_v22 = vld [vmem:[%s2458_s10] ss:$0 sm:$0xff] }
 0x922   : > { %v1221_v30 = vmul.f32 1.442695, %v1220_v29 }
 0x923   : > { %v1233_v31 = vpop.permute.xlu0 %1232 }
 0x924   : > { %1957 = vpow2.f32 %v1221_v30  ;;  %v1238_v32 = vsel %vm736_vm4, %v1233_v31, 0 }
 0x925   : > { %1821 = vmatpush3.bf16.msra.mxu0 %v1238_v32 }
 0x926   : > { %1832 = vmatprep.subr.bf16.mxu0 %v2048_v14 }
 0x92e   : > { %v1958_v33 = vpop.eup %1957 }
 0x92f   : > { %v1223_v34 = vsel %vm674_vm3, %v1958_v33, 0.0 }
 0x930   : > { %1224 = vadd.xlane.f32.xlu1 %v1223_v34 }
 0x95e   : > { %v1155_v37 = vpop.f32.mrb[24].mxu0 }
 0x95f   : > { %v1161_v38 = vadd.f32 %v1155_v37, %v2290_v53  ;;  %v1812_v39 = vpop.f32.mrb[25].mxu0 }
 0x960   : > { %v1158_v40 = vpop.f32.mrb[26].mxu0 }
 0x961   : > { %v1813_v41 = vpop.f32.mrb[27].mxu0 }
 0x9bd   : > { %v1225_v42 = vpop.xlane.xlu1 %1224 }
 0x9be   : > { %1959 = vrcp.f32 %v1225_v42 }
 0x9c8   : > { %v1960_v43 = vpop.eup %1959 }
 0x9c9   : > { %v1227_v44 = vmul.f32 %v1960_v43, %v1958_v33 }
 0x9cb   : > { %v1228_v45 = vpack.c.bf16 %v1227_v44, %v1227_v44 }
 0x9cd   : > { %1823 = vmatmul.mubr.msk.bf16.vlgmr.msra.gmra.mrb[28].mxu0 %vm674_vm3, %v1228_v45 }
 0x9ce   : > { %1836 = vmatprep.mubr.msk.bf16.mxu0 %vm2049_vm1, %v2048_v14  ;;  %1833 = vmatpush3.bf16.msra.mxu0 %v1931_v3 }
 0x9cf   : > { %1834 = vmatprep.subr.bf16.mxu0 %v2048_v14 }
 0xaa0   : > { %v1274_v46 = vpop.f32.mrb[28].mxu0 }
 0xaa1   : > { %v1280_v47 = vpack.c.bf16 %v1274_v46, %v1274_v46  ;;  %v1824_v48 = vpop.f32.mrb[29].mxu0 }
 0xaa2   : > { %v1277_v50 = vpop.f32.mrb[30].mxu0 }
 0xaa3   : > { %v1825_v51 = vpop.f32.mrb[31].mxu0  ;;  %1829 = vmatmul.mubr.msk.bf16.vlgmr.msra.gmra.mrb[20].mxu1 %vm674_vm3, %v1280_v47 }
 0xaa4   : > { %1856 = vmatprep.mubr.msk.bf16.mxu1 %vm2049_vm1, %v2048_v14  ;;  %1841 = vmatpush3.bf16.msra.mxu1 %v1933_v13 }
 0xaa5   : > { %1842 = vmatprep.subr.bf16.mxu1 %v2048_v14 }
 0xaa8   : > { %1843 = vmatpush3.bf16.msra.mxu1 %v1934_v15 }
 0xaa9   : > { %1844 = vmatprep.subr.bf16.mxu1 %v2048_v14 }
 0xaac   : > { %1845 = vmatpush3.bf16.msra.mxu1 %v1935_v16 }
 0xaad   : > { %1846 = vmatprep.subr.bf16.mxu1 %v2048_v14 }
 0xab0   : > { %1847 = vmatpush3.bf16.msra.mxu1 %v1936_v17 }
 0xab1   : > { %1848 = vmatprep.subr.bf16.mxu1 %v2048_v14 }
 0xab4   : > { %1849 = vmatpush3.bf16.msra.mxu1 %v1937_v18 }
 0xab5   : > { %1850 = vmatprep.subr.bf16.mxu1 %v2048_v14 }
 0xab8   : > { %1851 = vmatpush3.bf16.msra.mxu1 %v1938_v19 }
 0xab9   : > { %1852 = vmatprep.subr.bf16.mxu1 %v2048_v14 }
 0xabc   : > { %1853 = vmatpush3.bf16.msra.mxu1 %v1939_v20 }
 0xabd   : > { %1854 = vmatprep.subr.bf16.mxu1 %v2048_v14 }
 0xac0   : > { %1855 = vmatpush3.bf16.msra.mxu1 %v1940_v21 }
 0xb76   : > { %v1322_v52 = vpop.f32.mrb[20].mxu1 }
 0xb77   : > { %v1328_v53 = vadd.f32 %v1322_v52, %v1161_v38  ;;  %v1830_v54 = vpop.f32.mrb[21].mxu1 }
 0xb78   : > { %v1325_v56 = vpop.f32.mrb[22].mxu1 }
 0xb79   : > { %v1329_v57 = vadd.f32 %v1328_v53, %v2184_v0  ;;  %v1831_v58 = vpop.f32.mrb[23].mxu1  ;;  %v1932_v0 = vld [vmem:[%s2457_s9 + $0x8] sm:$0xff]  }
 0xb7a   : > { %1835 = vmatpush3.bf16.msra.mxu0 %v1932_v0 }
 0xb7b   : > { %v2337_v59 = vadd.f32 %v1680_v55, %v1329_v57 }
 0xb7d   : > { %v1340_v60 = vsel %vm458_vm0, %v2337_v59, 0.0 }
 0xb7e   : > { %1341 = vadd.xlane.f32.xlu1 %v1340_v60 }
 0xc0b   : > { %v1342_v61 = vpop.xlane.xlu1 %1341 }
 0xc0c   : > { %v1343_v62 = vmul.f32 0.03125, %v1342_v61 }
 0xc0e   : > { %v1344_v63 = vsub.f32 %v2337_v59, %v1343_v62 }
 0xc10   : > { %v1345_v1 = vmul.f32 %v1344_v63, %v1344_v63 }
 0xc12   : > { %v1346_v2 = vsel %vm458_vm0, %v1345_v1, 0.0 }
 0xc13   : > { %1347 = vadd.xlane.f32.xlu1 %v1346_v2 }
 0xca0   : > { %v1348_v4 = vpop.xlane.xlu1 %1347 }
 0xca1   : > { %v1349_v5 = vmul.f32 0.03125, %v1348_v4 }
 0xca3   : > { %v1350_v6 = vadd.f32 1e-05, %v1349_v5 }
 0xca5   : > { %1961 = vrsqrt.f32 %v1350_v6 }
 0xcaf   : > { %v1962_v7 = vpop.eup %1961 }
 0xcb0   : > { %v1352_v49 = vmul.f32 %v1962_v7, %v1344_v63 }
 0xcb2   : > { %v1359_v10 = vmul.f32 %v1681_v8, %v1352_v49 }
 0xcb4   : > { %v1366_v11 = vadd.f32 %v1682_v9, %v1359_v10 }
 0xcb6   : > { %v1367_v12 = vpack.c.bf16 %v1366_v11, %v1366_v11 }
 0xcb8   : > { %1837 = vmatmul.mubr.msk.bf16.vlgmr.msra.gmra.mrb[32].mxu0 %vm458_vm0, %v1367_v12 }
 0xd8b   : > { %v1428_v23 = vpop.f32.mrb[32].mxu0 }
 0xd8c   : > { %v1429_v24 = vadd.f32 %v1683_v22, %v1428_v23  ;;  %v1838_v25 = vpop.f32.mrb[33].mxu0 }
 0xd8d   : > { %v1431_v26 = vpop.f32.mrb[34].mxu0 }
 0xd8e   : > { %v1687_v27 = vmul.f32 -1.702, %v1429_v24  ;;  %v1839_v28 = vpop.f32.mrb[35].mxu0 }
 0xd90   : > { %v1436_v29 = vmul.f32 1.442695, %v1687_v27 }
 0xd92   : > { %1963 = vpow2.f32 %v1436_v29 }
 0xd9c   : > { %v1964_v14 = vpop.eup %1963 }
 0xd9d   : > { %v1438_v30 = vadd.f32 1.0, %v1964_v14 }
 0xd9f   : > { %1965 = vrcp.f32 %v1438_v30 }
 0xda9   : > { %v1966_v31 = vpop.eup %1965 }
 0xdaa   : > { %v1441_v32 = vmul.f32 %v1966_v31, %v1429_v24 }
 0xdac   : > { %v1442_v33 = vpack.c.bf16 %v1441_v32, %v1441_v32 }
 0xdae   : > { %1857 = vmatmul.mubr.bf16.vlgmr.msra.gmra.mrb[24].mxu1 %v1442_v33 }
 0xe81   : > { %v1541_v34 = vpop.f32.mrb[24].mxu1 }
 0xe82   : > { %v1547_v36 = vadd.f32 %v1541_v34, %v2337_v59  ;;  %v1858_v37 = vpop.f32.mrb[25].mxu1 }
 0xe83   : > { %v1544_v38 = vpop.f32.mrb[26].mxu1 }
 0xe84   : > { %v1555_v39 = vadd.f32 %v1696_v35, %v1547_v36  ;;  %v1859_v40 = vpop.f32.mrb[27].mxu1 }
 0xe86   : > { %1556 = vst.msk [vmem:[%s445_s23] sm:$0xff] %vm458_vm0, %v1555_v39 }
 0xe87   : > { %1980 = shalt.err (!%p1977_p5)
}
 0xe88   : > { %s1981_s0 = scalar_lea.hbm %s2400_s1, 128  ;;  %s1985_s23 = scalar_lea.hbm %s2461_s13, 256 }
 0xe89   : > { %p1982_p6 = scmp.ne.s32.totalorder %s2400_s1, %s1981_s0  ;;  %p1986_p10 = scmp.lt.u32.totalorder %s2400_s1, %s2461_s13 }
 0xe8a   : > { %p1987_p11 = scmp.lt.u32.totalorder %s1985_s23, %s1981_s0  ;;  %p1989_p13 = scmp.lt.u32.totalorder %s1981_s0, %s2400_s1 }
 0xe8b   : > { %p1983_p7 = pnand %p1982_p6, %p2164_p4 }
 0xe8c   : > { %p1988_p12 = por %p1987_p11, %p1986_p10 }
 0xe8d   : > { %p1984_p9 = pneg %p1983_p7 }
 0xe8e   : > { %p1990_p0 = por %p1989_p13, %p1988_p12 }
 0xe90   : > { %p1991_p1 = pnand %p1990_p0, %p1984_p9 }
 0xe92   : > { %1994 = shalt.err (!%p1991_p1)
}
 0xe93   : > { %1860 = dma.vmem_to_hbm [thread:$0]  (%p2164_p4), %s2402_s24, 128, %s2400_s1, %s1558_s28  }
 0xe94 PF: > { %p1866_p2 = scmp.ge.s32.totalorder %s2045_s30, 2  ;;  %s1584_s2 = sand.u32 1, %s2025_s25  }
 0xe95   : > { %s1585_s17 = scalar_lea.sflag [#allocation5], %s1584_s2 }
 0xe96   : > { %p1863_p3 = pnand %p1866_p2, %p2171_p8 }
 0xe98   : > { %2020 = dma.done.wait (!%p1863_p3), %s1585_s17, 128  }
 0xe99   : > { %2022 = vsyncadd (!%p1863_p3), %s1585_s17, 4294967168  ;;  %s26_s30 = sadd.s32 1, %s2045_s30   ;;  %s2472_s18 = sld [smem:[#allocation7_spill]] }
 0xe9a   : > { %p23_p5 = scmp.ge.s32.totalorder %s26_s30, 4   ;;  %s2473_s25 = smov %s2029_s26 }
 0xe9b   : > { %s2474_s26 = smov %s2033_s27  ;;  %s2475_s27 = smov %s2177_s21 }
 0xe9c   : > { %s2476_s28 = smov %s2041_s29  ;;  %25 = sbr.rel (!%p23_p5) target bundleno = 8 (0x8), region = 112 }
 0xe9f   : > { %s2477_s29 = smov %s2472_s18 }
 0xea3   :  { %1590 = vsyncpa [#allocation5], 1 }
 0xea4   :  { %1592 = vsyncpa [#allocation5 + $0x1], 1 }

</bundles_post_ra>
